<compile_context>
chip_gen: v7x
topology: tpu7x:2x2x1
jax: 0.10.0
libtpu: 0.0.40
codegen_flags: <defaults>
</compile_context>

<pallas_src>
import functools
import math

import jax
import jax.numpy as jnp
from jax.experimental import pallas as pl
from jax.experimental.pallas import tpu as pltpu

SF = 2
SL = 28
SW = 28
CONF = [int(SL * SW / SF / SF), int(100 / SF / SF), 10]  # [196, 25, 10]

_LANE = 128
_SUBLANE = 8


def _round_up(x, m):
    return ((x + m - 1) // m) * m


def _mlp_kernel(x_ref, w1_ref, b1_ref, w2_ref, b2_ref, o_ref):
    # In-kernel cast: x arrives in its native dtype (one HBM read), bf16 for the MXU.
    x = x_ref[...].astype(jnp.bfloat16)
    # Layer 1: bf16 x bf16 on the MXU, f32 accumulate; bias + ReLU in f32
    # (safe on v5e which lacks bf16 VPU).
    h = jnp.dot(x, w1_ref[...], preferred_element_type=jnp.float32)
    h = jnp.maximum(h + b1_ref[...], 0.0)
    # Layer 2: bf16 operands, f32 accumulate, f32 bias add; bf16 lane-dense store.
    o = jnp.dot(h.astype(jnp.bfloat16), w2_ref[...],
                preferred_element_type=jnp.float32)
    o_ref[...] = (o + b2_ref[...]).astype(jnp.bfloat16)


def prepare_params(w1, b1, w2, b2):
    """One-time parameter prep: lane-dense zero-padding + MXU-dtype casts.

    Hoisted out of the per-call forward. Weights are (in, out); biases (1, out).
    Padding 25 -> 128 and 10 -> 128 with zeros is numerically exact.
    """
    K, H = w1.shape
    O = w2.shape[1]
    h_pad = _round_up(H, _LANE)
    o_pad = _round_up(O, _LANE)
    w1p = jnp.zeros((K, h_pad), jnp.bfloat16).at[:, :H].set(w1.astype(jnp.bfloat16))
    b1p = jnp.zeros((1, h_pad), jnp.float32).at[:, :H].set(b1.reshape(1, H))
    w2p = jnp.zeros((h_pad, o_pad), jnp.bfloat16).at[:H, :O].set(w2.astype(jnp.bfloat16))
    b2p = jnp.zeros((1, o_pad), jnp.float32).at[:, :O].set(b2.reshape(1, O))
    return w1p, b1p, w2p, b2p


@functools.partial(jax.jit, static_argnames=("n_out", "tile_b"))
def mlp_forward(x, w1p, b1p, w2p, b2p, *, n_out=CONF[-1], tile_b=2048):
    """Forward pass. Returns bf16 logits of shape (B, n_out)."""
    B, K = x.shape
    h_pad = w1p.shape[1]
    o_pad = w2p.shape[1]

    # Batch tiling: no wrapper-side zero-pad; Pallas masks the ragged tail block.
    # Aim for >= 2 grid steps once B > 8 so the batch axis can split across the
    # two TensorCores on v7x; cap at tile_b (VMEM is never a constraint here).
    if B <= _SUBLANE:
        tb = B  # single block == full array dim (allowed by the (8,128) rule)
    else:
        tb = min(tile_b, _round_up(pl.cdiv(B, 2), _SUBLANE))
    grid = pl.cdiv(B, tb)

    # Advisory scheduling hint with the true HBM traffic of this mem-bound call.
    flops = 2 * B * (K * h_pad + h_pad * o_pad)
    bytes_accessed = (
        B * K * x.dtype.itemsize          # x read (streamed once)
        + B * o_pad * 2                   # bf16 padded output writeback
        + K * h_pad * 2 + h_pad * 4       # W1 + b1 (read once, VMEM-resident)
        + h_pad * o_pad * 2 + o_pad * 4   # W2 + b2
    )

    out = pl.pallas_call(
        _mlp_kernel,
        out_shape=jax.ShapeDtypeStruct((B, o_pad), jnp.bfloat16),
        grid=(grid,),
        in_specs=[
            pl.BlockSpec((tb, K), lambda i: (i, 0)),         # x streams per batch tile
            pl.BlockSpec((K, h_pad), lambda i: (0, 0)),      # W1: VMEM-resident
            pl.BlockSpec((1, h_pad), lambda i: (0, 0)),      # b1: VMEM-resident
            pl.BlockSpec((h_pad, o_pad), lambda i: (0, 0)),  # W2: VMEM-resident
            pl.BlockSpec((1, o_pad), lambda i: (0, 0)),      # b2: VMEM-resident
        ],
        out_specs=pl.BlockSpec((tb, o_pad), lambda i: (i, 0)),
        compiler_params=pltpu.CompilerParams(
            dimension_semantics=("parallel",),  # batch tiles across v7x's 2 TCs
        ),
        cost_estimate=pl.CostEstimate(
            flops=flops, transcendentals=0, bytes_accessed=bytes_accessed),
    )(x, w1p, b1p, w2p, b2p)

    # Cheap narrow slice of the lane padding; a fused consumer could take the
    # padded (B, 128) block directly and skip this extra pass.
    return out[:, :n_out]


def init_params(key, conf):
    """Deterministic init mimicking torch.nn.Linear default (U[-1/sqrt(fan_in), +...])."""
    params = []
    for fan_in, fan_out in zip(conf[:-1], conf[1:]):
        key, kw, kb = jax.random.split(key, 3)
        bound = 1.0 / math.sqrt(fan_in)
        # store weight as (in, out) so the kernel does x @ W directly
        w = jax.random.uniform(
            kw, (fan_in, fan_out), jnp.float32, minval=-bound, maxval=bound
        )
        b = jax.random.uniform(
            kb, (1, fan_out), jnp.float32, minval=-bound, maxval=bound
        )
        params.append((w, b))
    return params


if __name__ == "__main__":
    key = jax.random.PRNGKey(0)
    key, kx = jax.random.split(key)

    batch = 2
    x = jax.random.normal(kx, (batch, CONF[0]), jnp.float32)  # (2, 196)
    (w1, b1), (w2, b2) = init_params(key, CONF)
    w1p, b1p, w2p, b2p = prepare_params(w1, b1, w2, b2)

    out = jax.block_until_ready(mlp_forward(x, w1p, b1p, w2p, b2p))
    assert out.shape == (batch, CONF[-1])

    # Full-f32 reference (same math as the PyTorch forward); bf16-level tolerance
    # because the kernel runs both matmuls and the output store in bf16.
    hp = jax.lax.Precision.HIGHEST
    ref = jnp.maximum(jnp.dot(x, w1, precision=hp) + b1, 0.0)
    ref = jnp.dot(ref, w2, precision=hp) + b2
    assert jnp.allclose(out.astype(jnp.float32), ref, atol=2e-2, rtol=2e-2)

    # Exercise the tiled path: grid >= 2 and a ragged (non multiple-of-tile) batch,
    # with no wrapper-side zero padding of x.
    key, kx2 = jax.random.split(key)
    x2 = jax.random.normal(kx2, (300, CONF[0]), jnp.float32)
    out2 = jax.block_until_ready(mlp_forward(x2, w1p, b1p, w2p, b2p))
    ref2 = jnp.maximum(jnp.dot(x2, w1, precision=hp) + b1, 0.0)
    ref2 = jnp.dot(ref2, w2, precision=hp) + b2
    assert out2.shape == (300, CONF[-1])
    assert jnp.allclose(out2.astype(jnp.float32), ref2, atol=2e-2, rtol=2e-2)

    print("KERNEL_OK")
</pallas_src>

<mosaic_0001>
module attributes {stable_mosaic.version = 11 : i64} {
  func.func @_mlp_kernel(%arg0: i32, %arg1: memref<2x196xf32, #tpu.memory_space<vmem>>, %arg2: memref<196x128xbf16, #tpu.memory_space<vmem>>, %arg3: memref<1x128xf32, #tpu.memory_space<vmem>>, %arg4: memref<128x128xbf16, #tpu.memory_space<vmem>>, %arg5: memref<1x128xf32, #tpu.memory_space<vmem>>, %arg6: memref<2x128xbf16, #tpu.memory_space<vmem>>) attributes {dimension_semantics = [#tpu.dimension_semantics<parallel>], iteration_bounds = array<i64: 1>, scalar_prefetch = 0 : i64, scratch_operands = 0 : i64, tpu.core_type = #tpu.core_type<tc>, window_params = [{transform_indices = @transform_0, window_bounds = array<i64: 2, 196>}, {pipeline_mode = #tpu.pipeline_mode<synchronous>, transform_indices = @transform_1, window_bounds = array<i64: 196, 128>}, {pipeline_mode = #tpu.pipeline_mode<synchronous>, transform_indices = @transform_2, window_bounds = array<i64: 1, 128>}, {pipeline_mode = #tpu.pipeline_mode<synchronous>, transform_indices = @transform_3, window_bounds = array<i64: 128, 128>}, {pipeline_mode = #tpu.pipeline_mode<synchronous>, transform_indices = @transform_4, window_bounds = array<i64: 1, 128>}, {transform_indices = @transform_5, window_bounds = array<i64: 2, 128>}]} {
    %c0 = arith.constant 0 : index
    %c0_0 = arith.constant 0 : index
    %0 = vector.load %arg1[%c0, %c0_0] : memref<2x196xf32, #tpu.memory_space<vmem>>, vector<2x196xf32>
    %1 = arith.truncf %0 : vector<2x196xf32> to vector<2x196xbf16>
    %c0_1 = arith.constant 0 : index
    %c0_2 = arith.constant 0 : index
    %2 = vector.load %arg2[%c0_1, %c0_2] : memref<196x128xbf16, #tpu.memory_space<vmem>>, vector<196x128xbf16>
    %cst = arith.constant dense<0.000000e+00> : vector<2x128xf32>
    %3 = tpu.matmul %1, %2, %cst {dimension_numbers = #tpu.dot_dimension_numbers<[1], [0], [0], [1], [0, 0, 1, 1], [], []>} : vector<2x196xbf16>, vector<196x128xbf16>, vector<2x128xf32> -> vector<2x128xf32>
    %c0_3 = arith.constant 0 : index
    %c0_4 = arith.constant 0 : index
    %4 = vector.load %arg3[%c0_3, %c0_4] : memref<1x128xf32, #tpu.memory_space<vmem>>, vector<1x128xf32>
    %5 = vector.broadcast %4 : vector<1x128xf32> to vector<2x128xf32>
    %6 = arith.addf %3, %5 : vector<2x128xf32>
    %cst_5 = arith.constant 0.000000e+00 : f32
    %7 = vector.broadcast %cst_5 : f32 to vector<2x128xf32>
    %8 = arith.maximumf %6, %7 : vector<2x128xf32>
    %9 = arith.truncf %8 : vector<2x128xf32> to vector<2x128xbf16>
    %c0_6 = arith.constant 0 : index
    %c0_7 = arith.constant 0 : index
    %10 = vector.load %arg4[%c0_6, %c0_7] : memref<128x128xbf16, #tpu.memory_space<vmem>>, vector<128x128xbf16>
    %cst_8 = arith.constant dense<0.000000e+00> : vector<2x128xf32>
    %11 = tpu.matmul %9, %10, %cst_8 {dimension_numbers = #tpu.dot_dimension_numbers<[1], [0], [0], [1], [0, 0, 1, 1], [], []>} : vector<2x128xbf16>, vector<128x128xbf16>, vector<2x128xf32> -> vector<2x128xf32>
    %c0_9 = arith.constant 0 : index
    %c0_10 = arith.constant 0 : index
    %12 = vector.load %arg5[%c0_9, %c0_10] : memref<1x128xf32, #tpu.memory_space<vmem>>, vector<1x128xf32>
    %13 = vector.broadcast %12 : vector<1x128xf32> to vector<2x128xf32>
    %14 = arith.addf %11, %13 : vector<2x128xf32>
    %15 = arith.truncf %14 : vector<2x128xf32> to vector<2x128xbf16>
    %c0_11 = arith.constant 0 : index
    %c0_12 = arith.constant 0 : index
    %16 = vector.load %arg6[%c0_11, %c0_12] : memref<2x128xbf16, #tpu.memory_space<vmem>>, vector<2x128xbf16>
    tpu.vector_store %arg6[%c0_11, %c0_12], %15 {strides = array<i32>} : memref<2x128xbf16, #tpu.memory_space<vmem>>, vector<2x128xbf16>,
    return
  }
  func.func @transform_0(%arg0: i32) -> (i32, i32) {
    %c0_i32 = arith.constant 0 : i32
    %c0_i32_0 = arith.constant 0 : i32
    return %arg0, %c0_i32 : i32, i32
  }
  func.func @transform_1(%arg0: i32) -> (i32, i32) {
    %c0_i32 = arith.constant 0 : i32
    %c0_i32_0 = arith.constant 0 : i32
    %c0_i32_1 = arith.constant 0 : i32
    return %c0_i32, %c0_i32_0 : i32, i32
  }
  func.func @transform_2(%arg0: i32) -> (i32, i32) {
    %c0_i32 = arith.constant 0 : i32
    %c0_i32_0 = arith.constant 0 : i32
    %c0_i32_1 = arith.constant 0 : i32
    return %c0_i32, %c0_i32_0 : i32, i32
  }
  func.func @transform_3(%arg0: i32) -> (i32, i32) {
    %c0_i32 = arith.constant 0 : i32
    %c0_i32_0 = arith.constant 0 : i32
    %c0_i32_1 = arith.constant 0 : i32
    return %c0_i32, %c0_i32_0 : i32, i32
  }
  func.func @transform_4(%arg0: i32) -> (i32, i32) {
    %c0_i32 = arith.constant 0 : i32
    %c0_i32_0 = arith.constant 0 : i32
    %c0_i32_1 = arith.constant 0 : i32
    return %c0_i32, %c0_i32_0 : i32, i32
  }
  func.func @transform_5(%arg0: i32) -> (i32, i32) {
    %c0_i32 = arith.constant 0 : i32
    %c0_i32_0 = arith.constant 0 : i32
    return %arg0, %c0_i32 : i32, i32
  }
}

</mosaic_0001>

<bundles_post_ra>
// kernel: mlp_forward.1
= control target key start
LH: loop header
LB: loop body
LE: loop exit
PB: predicated region body
PF: predicated region fallthrough
CT: control target
= control target key end

     0   :  { %10 = vsyncpa [#allocation3], 0  ;;  %s660_s0 = inlined_call_operand.hbm [shape: f32[2,196], index: 0, kind: input, shape index: {}]   ;;  %s661_s1 = inlined_call_operand.hbm [shape: bf16[196,128], index: 1, kind: input, shape index: {}]   ;;  %s662_s2 = inlined_call_operand.vmem [shape: f32[1,128], index: 2, kind: input, shape index: {}]   ;;  %s663_s3 = inlined_call_operand.hbm [shape: bf16[128,128], index: 3, kind: input, shape index: {}]   ;;  %s664_s4 = inlined_call_operand.vmem [shape: f32[1,128], index: 4, kind: input, shape index: {}]   ;;  %s665_s5 = inlined_call_operand.hbm [shape: bf16[2,128], index: 5, kind: output, shape index: {}]  }
   0x1   :  { %11 = vsyncpa [#allocation6], 0 }
   0x2   :  { %12 = vsyncpa [#allocation4], 0  ;;  %s539_s18 = smov [#allocation5]   ;;  %s445_s22 = scalar_lea.hbm %s661_s1, 1600 }
   0x3   :  { %s28_s19 = sshll.u32 %s539_s18, 4  ;;  %p446_p0 = scmp.ne.s32.totalorder %s661_s1, %s445_s22  ;;  %s29_s19 = int_to_ptr.vmem [resolvable:$true] %s28_s19 }
   0x4   :  { %p449_p1 = scmp.lt.u32.totalorder %s445_s22, %s661_s1 }
   0x6   :  { %p451_p2 = pnand %p449_p1, %p446_p0 }
   0x8   :  { %454 = shalt.err (!%p451_p2)
}
   0x9   :  { %s455_s27 = scalar_lea.vmem %s29_s19, 1600  ;;  %p460_p4 = scmp.lt.s32.totalorder %s29_s19, %s29_s19 }
   0xa   :  { %p456_p3 = scmp.ne.s32.totalorder %s29_s19, %s455_s27  ;;  %p461_p5 = scmp.lt.s32.totalorder %s455_s27, %s455_s27 }
   0xc   :  { %p462_p6 = por %p461_p5, %p460_p4 }
   0xe   :  { %p463_p7 = pnand %p462_p6, %p456_p3 }
  0x10   :  { %466 = shalt.err (!%p463_p7)
}
  0x11   :  { %s540_s28 = smov 64   ;;  %s541_s29 = smov 4  }
  0x12   :  { %34 = dma.hbm_to_vmem [thread:$0]  %s661_s1, 1600, %s29_s19, [#allocation6], %s540_s28, %s540_s28, %s541_s29  }
  0x13   :  { %s542_s7 = smov [#allocation2]   ;;  %s543_s9 = smov [#allocation7]  }
  0x14   :  { %s19_s8 = sshll.u32 %s542_s7, 4  ;;  %s42_s10 = sshll.u32 %s543_s9, 4  ;;  %s20_s8 = int_to_ptr.vmem [resolvable:$true] %s19_s8  ;;  %s43_s10 = int_to_ptr.vmem [resolvable:$true] %s42_s10 }
  0x15   :  { %s467_s13 = scalar_lea.hbm %s660_s0, 64 }
  0x16   :  { %p468_p8 = scmp.ne.s32.totalorder %s660_s0, %s467_s13  ;;  %p471_p9 = scmp.lt.u32.totalorder %s467_s13, %s660_s0 }
  0x18   :  { %p473_p10 = pnand %p471_p9, %p468_p8 }
  0x1a   :  { %476 = shalt.err (!%p473_p10)
}
  0x1b   :  { %s477_s1 = scalar_lea.vmem %s20_s8, 64  ;;  %p482_p12 = scmp.lt.s32.totalorder %s20_s8, %s20_s8 }
  0x1c   :  { %p478_p11 = scmp.ne.s32.totalorder %s20_s8, %s477_s1  ;;  %p483_p13 = scmp.lt.s32.totalorder %s477_s1, %s477_s1 }
  0x1e   :  { %p484_p0 = por %p483_p13, %p482_p12 }
  0x20   :  { %p485_p1 = pnand %p484_p0, %p478_p11 }
  0x22   :  { %488 = shalt.err (!%p485_p1)
}
  0x23   :  { %22 = dma.hbm_to_vmem [thread:$0]  %s660_s0, 64, %s20_s8, [#allocation3]  }
  0x24   :  { %s489_s22 = scalar_lea.hbm %s663_s3, 1024 }
  0x25   :  { %p490_p2 = scmp.ne.s32.totalorder %s663_s3, %s489_s22  ;;  %p493_p3 = scmp.lt.u32.totalorder %s489_s22, %s663_s3 }
  0x27   :  { %p495_p4 = pnand %p493_p3, %p490_p2 }
  0x29   :  { %498 = shalt.err (!%p495_p4)
}
  0x2a   :  { %s499_s27 = scalar_lea.vmem %s43_s10, 1024  ;;  %p504_p6 = scmp.lt.s32.totalorder %s43_s10, %s43_s10 }
  0x2b   :  { %p500_p5 = scmp.ne.s32.totalorder %s43_s10, %s499_s27  ;;  %p505_p7 = scmp.lt.s32.totalorder %s499_s27, %s499_s27 }
  0x2d   :  { %p506_p8 = por %p505_p7, %p504_p6 }
  0x2f   :  { %p507_p9 = pnand %p506_p8, %p500_p5 }
  0x31   :  { %510 = shalt.err (!%p507_p9)
}
  0x32   :  { %48 = dma.hbm_to_vmem [thread:$0]  %s663_s3, 1024, %s43_s10, [#allocation6], %s540_s28, %s540_s28, %s541_s29  }
  0x33   :  { %533 = dma.done.wait [#allocation3], 64  }
  0x34   :  { %534 = vsyncadd [#allocation3], 4294967232 }
  0x35   :  { %535 = dma.done.wait [#allocation6], 2624  }
  0x36   :  { %536 = vsyncadd [#allocation6], 4294964672  ;;  %v544_v0 = vmov 0   ;;  %v545_v1 = vmov 0.0   ;;  %v424_v2 = vld [vmem:[#allocation5] sm:$0xff]   ;;  %v425_v3 = vld [vmem:[#allocation5 + $0x8] sm:$0xff]  }
  0x37   :  { %190 = vmatprep.subr.bf16.mxu0 %v544_v0  ;;  %395 = vmatprep.subr.bf16.mxu1 %v545_v1  ;;  %v426_v4 = vld [vmem:[#allocation5 + $0x10] sm:$0xff]   ;;  %v427_v5 = vld [vmem:[#allocation5 + $0x18] sm:$0xff]   ;;  %v428_v6 = vld [vmem:[#allocation5 + $0x20] sm:$0xff]   ;;  %vm182_vm0 = vcmask 556032   ;;  %vm186_vm1 = vcmask 1041408   ;;  %vm546_vm2 = vmmov 0  }
  0x38   :  { %191 = vmatpush1.bf16.msra.mxu0 %v424_v2  ;;  %v437_v7 = vld [vmem:[#allocation7] sm:$0xff]   ;;  %v361_v8 = vld.sshfl [vmem:[#allocation2] sm:$0x33 pattern:$0x76325410]  ;;  %v438_v10 = vld [vmem:[#allocation7 + $0x8] sm:$0xff]   ;;  %411 = vmatprep.mubr.msk.bf16.mxu1 %vm546_vm2, %v545_v1 }
  0x39   :  { %192 = vmatprep.subr.bf16.mxu0 %v544_v0  ;;  %v70_v9 = vcombine.high %v361_v8, %v361_v8  ;;  %396 = vmatpush3.bf16.msra.mxu1 %v437_v7  ;;  %v429_v12 = vld [vmem:[#allocation5 + $0x28] sm:$0xff]   ;;  %v439_v13 = vld [vmem:[#allocation7 + $0x10] sm:$0xff]   ;;  %v440_v15 = vld [vmem:[#allocation7 + $0x18] sm:$0xff]   ;;  %v73_v25 = vpack.c.bf16 %v361_v8, %v361_v8  ;;  %s547_s7 = smov [#allocation8]  }
  0x3a   :  { %397 = vmatprep.subr.bf16.mxu1 %v545_v1  ;;  %v430_v14 = vld [vmem:[#allocation5 + $0x30] sm:$0xff]   ;;  %v431_v16 = vld [vmem:[#allocation5 + $0x38] sm:$0xff]   ;;  %v441_v17 = vld [vmem:[#allocation7 + $0x20] sm:$0xff]   ;;  %s351_s8 = sshll.u32 %s547_s7, 4  ;;  %s352_s8 = int_to_ptr.vmem [resolvable:$true] %s351_s8 }
  0x3b   :  { %v74_v11 = vpack.c.bf16 %v70_v9, %v70_v9  ;;  %v432_v18 = vld [vmem:[#allocation5 + $0x40] sm:$0xff]   ;;  %v442_v19 = vld [vmem:[#allocation7 + $0x28] sm:$0xff]   ;;  %v435_v22 = vld [vmem:[#allocation5 + $0x58] sm:$0xff]   ;;  %s515_s9 = scalar_lea.vmem %s352_s8, 32  ;;  %p516_p11 = scmp.lt.s32.totalorder %s352_s8, %s352_s8 }
  0x3c   :  { %193 = vmatpush1.bf16.msra.mxu0 %v425_v3  ;;  %v433_v20 = vld [vmem:[#allocation5 + $0x48] sm:$0xff]   ;;  %v434_v21 = vld [vmem:[#allocation5 + $0x50] sm:$0xff]   ;;  %v436_v23 = vld [vmem:[#allocation5 + $0x60] ss:$0 sps:$4 sm:$0x33]  }
  0x3d   :  { %194 = vmatprep.subr.bf16.mxu0 %v544_v0  ;;  %376 = vmatprep.mubr.msk.bf16.mxu0 %vm182_vm0, %v74_v11  ;;  %v188_v24 = vsel %vm186_vm1, %v436_v23, 0  ;;  %v443_v26 = vld [vmem:[#allocation7 + $0x30] sm:$0xff]   ;;  %v444_v27 = vld [vmem:[#allocation7 + $0x38] sm:$0xff]  }
  0x3e   :  { %398 = vmatpush3.bf16.msra.mxu1 %v438_v10  ;;  %v362_v28 = vld [vmem:[%s662_s2] ss:$0 sm:$0xff]  ;;  %s511_s2 = scalar_lea.vmem %s352_s8, 16 }
  0x3f   :  { %399 = vmatprep.subr.bf16.mxu1 %v545_v1  ;;  %v377_v36 = vld [vmem:[%s664_s4] ss:$0 sm:$0xff]  ;;  %p512_p10 = scmp.ne.s32.totalorder %s352_s8, %s511_s2  ;;  %p517_p12 = scmp.lt.s32.totalorder %s515_s9, %s511_s2 }
  0x40   :  { %195 = vmatpush1.bf16.msra.mxu0 %v426_v4 }
  0x41   :  { %196 = vmatprep.subr.bf16.mxu0 %v544_v0  ;;  %p518_p13 = por %p517_p12, %p516_p11 }
  0x42   :  { %400 = vmatpush3.bf16.msra.mxu1 %v439_v13 }
  0x43   :  { %401 = vmatprep.subr.bf16.mxu1 %v545_v1  ;;  %p519_p0 = pnand %p518_p13, %p512_p10 }
  0x44   :  { %197 = vmatpush1.bf16.msra.mxu0 %v427_v5 }
  0x45   :  { %198 = vmatprep.subr.bf16.mxu0 %v544_v0 }
  0x46   :  { %402 = vmatpush3.bf16.msra.mxu1 %v440_v15 }
  0x47   :  { %403 = vmatprep.subr.bf16.mxu1 %v545_v1 }
  0x48   :  { %199 = vmatpush1.bf16.msra.mxu0 %v428_v6 }
  0x49   :  { %200 = vmatprep.subr.bf16.mxu0 %v544_v0 }
  0x4a   :  { %404 = vmatpush3.bf16.msra.mxu1 %v441_v17 }
  0x4b   :  { %405 = vmatprep.subr.bf16.mxu1 %v545_v1 }
  0x4c   :  { %201 = vmatpush1.bf16.msra.mxu0 %v429_v12 }
  0x4d   :  { %202 = vmatprep.subr.bf16.mxu0 %v544_v0 }
  0x4e   :  { %406 = vmatpush3.bf16.msra.mxu1 %v442_v19 }
  0x4f   :  { %407 = vmatprep.subr.bf16.mxu1 %v545_v1 }
  0x50   :  { %203 = vmatpush1.bf16.msra.mxu0 %v430_v14 }
  0x51   :  { %204 = vmatprep.subr.bf16.mxu0 %v544_v0 }
  0x52   :  { %408 = vmatpush3.bf16.msra.mxu1 %v443_v26 }
  0x53   :  { %409 = vmatprep.subr.bf16.mxu1 %v545_v1 }
  0x54   :  { %205 = vmatpush1.bf16.msra.mxu0 %v431_v16 }
  0x55   :  { %206 = vmatprep.subr.bf16.mxu0 %v544_v0 }
  0x56   :  { %410 = vmatpush3.bf16.msra.mxu1 %v444_v27 }
  0x58   :  { %207 = vmatpush1.bf16.msra.mxu0 %v432_v18 }
  0x59   :  { %208 = vmatprep.subr.bf16.mxu0 %v544_v0 }
  0x5c   :  { %209 = vmatpush1.bf16.msra.mxu0 %v433_v20 }
  0x5d   :  { %210 = vmatprep.subr.bf16.mxu0 %v544_v0 }
  0x60   :  { %211 = vmatpush1.bf16.msra.mxu0 %v434_v21 }
  0x61   :  { %212 = vmatprep.subr.bf16.mxu0 %v544_v0 }
  0x64   :  { %213 = vmatpush1.bf16.msra.mxu0 %v435_v22 }
  0x65   :  { %214 = vmatprep.subr.bf16.mxu0 %v544_v0 }
  0x68   :  { %215 = vmatpush1.bf16.msra.mxu0 %v188_v24 }
  0x6b   :  { %223 = vmatmul.mubr.bf16.vlgmr.msra.gmra.mrb[0].mxu0 %v73_v25 }
 0x13e   :  { %v224_v29 = vpop.f32.mrb[0].mxu0 }
 0x13f   :  { %v225_v30 = vadd.f32 %v362_v28, %v224_v29  ;;  %v226_v31 = vpop.f32.mrb[1].mxu0 }
 0x140   :  { %v227_v32 = vpop.f32.mrb[2].mxu0 }
 0x141   :  { %v230_v33 = vmax.f32 %v225_v30, 0.0  ;;  %v228_v34 = vpop.f32.mrb[3].mxu0 }
 0x143   :  { %v231_v35 = vpack.c.bf16 %v230_v33, %v230_v33 }
 0x145   :  { %412 = vmatmul.mubr.bf16.vlgmr.msra.gmra.mrb[0].mxu1 %v231_v35 }
 0x218   :  { %v337_v37 = vpop.f32.mrb[0].mxu1 }
 0x219   :  { %v338_v38 = vadd.f32 %v377_v36, %v337_v37  ;;  %v413_v39 = vpop.f32.mrb[1].mxu1 }
 0x21a   :  { %v340_v40 = vpop.f32.mrb[2].mxu1 }
 0x21b   :  { %v343_v41 = vpack.c.bf16 %v338_v38, %v338_v38  ;;  %v414_v42 = vpop.f32.mrb[3].mxu1 }
 0x21d   :  { %344 = vst [vmem:[#allocation8] sm:$0x1] %v343_v41 }
 0x21e   :  { %522 = shalt.err (!%p519_p0)
}
 0x21f   :  { %s523_s11 = scalar_lea.hbm %s665_s5, 16 }
 0x220   :  { %p524_p1 = scmp.ne.s32.totalorder %s665_s5, %s523_s11  ;;  %p527_p2 = scmp.lt.u32.totalorder %s523_s11, %s665_s5 }
 0x222   :  { %p529_p3 = pnand %p527_p2, %p524_p1 }
 0x224   :  { %532 = shalt.err (!%p529_p3)
}
 0x225   :  { %354 = dma.vmem_to_hbm [thread:$0]  %s352_s8, 16, %s665_s5, [#allocation4]  }
 0x226   :  { %537 = dma.done.wait [#allocation4], 16  }
 0x227   :  { %538 = vsyncadd [#allocation4], 4294967280 }
 0x228   :  { %358 = vsyncpa [#allocation3], 1 }
 0x229   :  { %359 = vsyncpa [#allocation6], 1 }
 0x22a   :  { %360 = vsyncpa [#allocation4], 1 }

</bundles_post_ra>
